<compile_context>
chip_gen: v7x
topology: tpu7x:2x2x1
jax: 0.10.0
libtpu: 0.0.40
codegen_flags: <defaults>
</compile_context>

<pallas_src>
import functools

import jax
import jax.numpy as jnp
import numpy as np
from jax.experimental import pallas as pl
from jax.experimental.pallas import tpu as pltpu

BN_EPS = 1e-5
LANES = 128  # width of the conv intermediates and of the padded logits slab


# ------------------------------ Pallas kernel ------------------------------ #

def fused_kernel(x_ref, w1_ref, s1_ref, t1_ref, w2_ref, s2_ref, t2_ref,
                 fw1_ref, fb1_ref, fw2_ref, fb2_ref, fw3_ref, fb3_ref,
                 fw4_ref, fb4_ref, o_ref):
    """Whole network for one tile of samples.

    x_ref : (TM, 16)   one 4x4x1 image per row (raster order h*4+w)
    w1_ref: (16, 128)  conv1 weight with the pool-window gather folded in:
                       column p*32 + s*8 + c holds w1[c] at the pixel that is
                       pool-position p of pooled-output position s.
    s1/t1 : (1, 128)   conv1 BatchNorm (eval) scale/shift tiled over (p, s).
    w2_ref: (32, 128)  kron(I4, w2^T): conv2 applied to all 4 positions at once.
    s2/t2 : (1, 128)   conv2 BatchNorm scale/shift tiled over s.
    fw*/fb*            MLP weights (transposed) / biases; fc4 zero-padded to 128.
    o_ref : (TM, 128)  logits in the first num_classes lanes.
    """
    x = x_ref[...]                                                     # (TM, 16)

    # ---- ConvBlock 1: Conv1x1 -> ReLU -> BatchNorm -> MaxPool(2,2) ----
    y = jnp.dot(x, w1_ref[...], preferred_element_type=jnp.float32)   # (TM, 128)
    y = jnp.maximum(y, 0.0) * s1_ref[...] + t1_ref[...]
    # MaxPool == max over the 4 contiguous 32-lane chunks (pool-position axis).
    p1 = jnp.maximum(jnp.maximum(y[:, 0:32], y[:, 32:64]),
                     jnp.maximum(y[:, 64:96], y[:, 96:128]))           # (TM, 32)

    # ---- ConvBlock 2 (block-diagonal weight) ----
    y = jnp.dot(p1, w2_ref[...], preferred_element_type=jnp.float32)  # (TM, 128)
    y = jnp.maximum(y, 0.0) * s2_ref[...] + t2_ref[...]
    p2 = jnp.maximum(jnp.maximum(y[:, 0:32], y[:, 32:64]),
                     jnp.maximum(y[:, 64:96], y[:, 96:128]))           # (TM, 32) == flatten

    # ---- MLP head (Dropout is identity in eval mode) ----
    h = jnp.maximum(
        jnp.dot(p2, fw1_ref[...], preferred_element_type=jnp.float32) + fb1_ref[...], 0.0)
    h = jnp.maximum(
        jnp.dot(h, fw2_ref[...], preferred_element_type=jnp.float32) + fb2_ref[...], 0.0)
    h = jnp.maximum(
        jnp.dot(h, fw3_ref[...], preferred_element_type=jnp.float32) + fb3_ref[...], 0.0)
    o_ref[...] = (jnp.dot(h, fw4_ref[...], preferred_element_type=jnp.float32)
                  + fb4_ref[...])
    # TODO(synk): train-mode Dropout / Dropout2d and BN batch statistics are
    # intentionally not implemented (inference-only kernel).


# --------------------------- Host-side packing ------------------------------ #

def _pool_gather_matrix():
    """(16, 16) 0/1 matrix G with G[pix, p*4 + s] = 1 iff raster pixel `pix`
    of a 4x4 image is pool-position p of 2x2-pool output position s."""
    g = np.zeros((16, 16), np.float32)
    for oh in range(2):
        for ow in range(2):
            s = oh * 2 + ow
            for dh in range(2):
                for dw in range(2):
                    p = dh * 2 + dw
                    pix = (2 * oh + dh) * 4 + (2 * ow + dw)
                    g[pix, p * 4 + s] = 1.0
    return g


_G16 = _pool_gather_matrix()


def pack_params(params):
    """Fold BN (eval) into scale/shift and build the lane-dense fused weights."""
    (w1, g1, b1, m1, v1) = params["conv1"]
    (w2, g2, b2, m2, v2) = params["conv2"]
    (fw1, fb1), (fw2, fb2), (fw3, fb3), (fw4, fb4) = params["fcs"]
    num_classes = fw4.shape[0]

    inv1 = 1.0 / jnp.sqrt(v1 + BN_EPS)
    scale1, shift1 = g1 * inv1, b1 - m1 * g1 * inv1
    inv2 = 1.0 / jnp.sqrt(v2 + BN_EPS)
    scale2, shift2 = g2 * inv2, b2 - m2 * g2 * inv2

    # conv1: pool-window gather folded into the weight -> (16, 128),
    # column (p*4+s)*8 + c = w1[c] at pixel pix(s, p).
    w1_big = jnp.kron(jnp.asarray(_G16), w1.reshape(1, 8))
    s1 = jnp.tile(scale1, 16).reshape(1, LANES)
    t1 = jnp.tile(shift1, 16).reshape(1, LANES)

    # conv2: block-diagonal -> one matmul for all 4 spatial positions, (32, 128).
    w2_big = jnp.kron(jnp.eye(4, dtype=jnp.float32), w2.T)
    s2 = jnp.tile(scale2, 4).reshape(1, LANES)
    t2 = jnp.tile(shift2, 4).reshape(1, LANES)

    # fc4 zero-padded to a lane-dense 128-wide output slab.
    fw4p = jnp.zeros((64, LANES), jnp.float32).at[:, :num_classes].set(fw4.T)
    fb4p = jnp.zeros((1, LANES), jnp.float32).at[:, :num_classes].set(fb4)

    return (w1_big, s1, t1, w2_big, s2, t2,
            fw1.T, fb1.reshape(1, -1), fw2.T, fb2.reshape(1, -1),
            fw3.T, fb3.reshape(1, -1), fw4p, fb4p)


def _round_up(x, m):
    return (x + m - 1) // m * m


@functools.partial(jax.jit, static_argnames=("tile_m",))
def forward(x_nchw, params, *, tile_m=512):
    n, c, h, w = x_nchw.shape
    assert (c, h, w) == (1, 4, 4), "model expects (N, 1, 4, 4) inputs"
    num_classes = params["fcs"][3][0].shape[0]

    x = x_nchw.reshape(n, h * w)                      # (N, 16), raster order
    packed = pack_params(params)

    # Row tiling: biggest tile up to tile_m, batch padded to a tile multiple.
    tm = min(tile_m, _round_up(n, 8))
    n_pad = _round_up(n, tm)
    if n_pad != n:
        x = jnp.pad(x, ((0, n_pad - n), (0, 0)))

    weight_spec = pl.BlockSpec(memory_space=pltpu.MemorySpace.VMEM)
    out = pl.pallas_call(
        fused_kernel,
        out_shape=jax.ShapeDtypeStruct((n_pad, LANES), jnp.float32),
        grid=(n_pad // tm,),
        in_specs=[pl.BlockSpec((tm, h * w), lambda i: (i, 0))]
                 + [weight_spec] * len(packed),
        out_specs=pl.BlockSpec((tm, LANES), lambda i: (i, 0)),
        compiler_params=pltpu.CompilerParams(
            dimension_semantics=("parallel",),          # 2-TC sharding on v7x
            vmem_limit_bytes=32 * 1024 * 1024),          # well under v7x 64 MiB
    )(x, *packed)
    return out[:n, :num_classes]


# ------------------------- Deterministic parameters ------------------------- #

def init_params(key, num_classes=5):
    keys = jax.random.split(key, 6)

    def conv_params(k, cin, cout):
        k1, k2, k3, k4, k5 = jax.random.split(k, 5)
        w = 0.5 * jax.random.normal(k1, (cout, cin), jnp.float32)
        gamma = 1.0 + 0.1 * jax.random.normal(k2, (cout,), jnp.float32)
        beta = 0.1 * jax.random.normal(k3, (cout,), jnp.float32)
        rmean = 0.1 * jax.random.normal(k4, (cout,), jnp.float32)
        rvar = jnp.abs(jax.random.normal(k5, (cout,), jnp.float32)) + 0.5
        return (w, gamma, beta, rmean, rvar)

    def linear(k, fin, fout):
        k1, k2 = jax.random.split(k)
        bound = 1.0 / np.sqrt(fin)
        wt = jax.random.uniform(k1, (fout, fin), jnp.float32, -bound, bound)
        b = jax.random.uniform(k2, (fout,), jnp.float32, -bound, bound)
        return (wt, b)

    return {
        "conv1": conv_params(keys[0], 1, 8),
        "conv2": conv_params(keys[1], 8, 32),
        "fcs": (linear(keys[2], 32, 64),
                linear(keys[3], 64, 128),
                linear(keys[4], 128, 64),
                linear(keys[5], 64, num_classes)),
    }


# ---------------------------- Pure-JAX reference ---------------------------- #

def reference(x_nchw, params):
    def block(x, w, gamma, beta, rm, rv):
        y = jnp.einsum('nchw,oc->nohw', x, w)                       # 1x1 conv, no bias
        y = jnp.maximum(y, 0.0)                                     # ReLU
        y = (y - rm[None, :, None, None]) / jnp.sqrt(rv + BN_EPS)[None, :, None, None]
        y = y * gamma[None, :, None, None] + beta[None, :, None, None]
        n, c, h, w_ = y.shape
        return y.reshape(n, c, h // 2, 2, w_ // 2, 2).max(axis=(3, 5))  # MaxPool 2x2

    x = block(x_nchw, *params["conv1"])
    x = block(x, *params["conv2"])
    x = x.reshape(x.shape[0], -1)
    (w1, b1), (w2, b2), (w3, b3), (w4, b4) = params["fcs"]
    x = jnp.maximum(x @ w1.T + b1, 0.0)
    x = jnp.maximum(x @ w2.T + b2, 0.0)
    x = jnp.maximum(x @ w3.T + b3, 0.0)
    return x @ w4.T + b4


if __name__ == "__main__":
    key = jax.random.PRNGKey(0)
    pkey, xkey, xkey2 = jax.random.split(key, 3)
    params = init_params(pkey, num_classes=5)

    # NCHW input as in PyTorch: 4x4 spatial so two 2x2 pools give 1x1 and
    # flatten yields the 32 features fc1 expects.
    x = jax.random.normal(xkey, (2, 1, 4, 4), jnp.float32)
    out = jax.block_until_ready(forward(x, params))
    np.testing.assert_allclose(np.asarray(out), np.asarray(reference(x, params)),
                               rtol=1e-4, atol=1e-5)

    # Second check: non-multiple batch with >1 grid blocks (padding + tiling path).
    x2 = jax.random.normal(xkey2, (100, 1, 4, 4), jnp.float32)
    out2 = jax.block_until_ready(forward(x2, params, tile_m=64))
    np.testing.assert_allclose(np.asarray(out2), np.asarray(reference(x2, params)),
                               rtol=1e-4, atol=1e-5)

    print("KERNEL_OK")
</pallas_src>

<mosaic_0001>
module attributes {stable_mosaic.version = 11 : i64} {
  func.func @fused_kernel(%arg0: i32, %arg1: memref<8x16xf32, #tpu.memory_space<vmem>>, %arg2: memref<16x128xf32, #tpu.memory_space<vmem>>, %arg3: memref<1x128xf32, #tpu.memory_space<vmem>>, %arg4: memref<1x128xf32, #tpu.memory_space<vmem>>, %arg5: memref<32x128xf32, #tpu.memory_space<vmem>>, %arg6: memref<1x128xf32, #tpu.memory_space<vmem>>, %arg7: memref<1x128xf32, #tpu.memory_space<vmem>>, %arg8: memref<32x64xf32, #tpu.memory_space<vmem>>, %arg9: memref<1x64xf32, #tpu.memory_space<vmem>>, %arg10: memref<64x128xf32, #tpu.memory_space<vmem>>, %arg11: memref<1x128xf32, #tpu.memory_space<vmem>>, %arg12: memref<128x64xf32, #tpu.memory_space<vmem>>, %arg13: memref<1x64xf32, #tpu.memory_space<vmem>>, %arg14: memref<64x128xf32, #tpu.memory_space<vmem>>, %arg15: memref<1x128xf32, #tpu.memory_space<vmem>>, %arg16: memref<8x128xf32, #tpu.memory_space<vmem>>) attributes {dimension_semantics = [#tpu.dimension_semantics<parallel>], iteration_bounds = array<i64: 1>, scalar_prefetch = 0 : i64, scratch_operands = 0 : i64, tpu.core_type = #tpu.core_type<tc>, window_params = [{transform_indices = @transform_0, window_bounds = array<i64: 8, 16>}, {pipeline_mode = #tpu.pipeline_mode<synchronous>, transform_indices = @transform_1, window_bounds = array<i64: 16, 128>}, {pipeline_mode = #tpu.pipeline_mode<synchronous>, transform_indices = @transform_2, window_bounds = array<i64: 1, 128>}, {pipeline_mode = #tpu.pipeline_mode<synchronous>, transform_indices = @transform_3, window_bounds = array<i64: 1, 128>}, {pipeline_mode = #tpu.pipeline_mode<synchronous>, transform_indices = @transform_4, window_bounds = array<i64: 32, 128>}, {pipeline_mode = #tpu.pipeline_mode<synchronous>, transform_indices = @transform_5, window_bounds = array<i64: 1, 128>}, {pipeline_mode = #tpu.pipeline_mode<synchronous>, transform_indices = @transform_6, window_bounds = array<i64: 1, 128>}, {pipeline_mode = #tpu.pipeline_mode<synchronous>, transform_indices = @transform_7, window_bounds = array<i64: 32, 64>}, {pipeline_mode = #tpu.pipeline_mode<synchronous>, transform_indices = @transform_8, window_bounds = array<i64: 1, 64>}, {pipeline_mode = #tpu.pipeline_mode<synchronous>, transform_indices = @transform_9, window_bounds = array<i64: 64, 128>}, {pipeline_mode = #tpu.pipeline_mode<synchronous>, transform_indices = @transform_10, window_bounds = array<i64: 1, 128>}, {pipeline_mode = #tpu.pipeline_mode<synchronous>, transform_indices = @transform_11, window_bounds = array<i64: 128, 64>}, {pipeline_mode = #tpu.pipeline_mode<synchronous>, transform_indices = @transform_12, window_bounds = array<i64: 1, 64>}, {pipeline_mode = #tpu.pipeline_mode<synchronous>, transform_indices = @transform_13, window_bounds = array<i64: 64, 128>}, {pipeline_mode = #tpu.pipeline_mode<synchronous>, transform_indices = @transform_14, window_bounds = array<i64: 1, 128>}, {transform_indices = @transform_15, window_bounds = array<i64: 8, 128>}]} {
    %c0 = arith.constant 0 : index
    %c0_0 = arith.constant 0 : index
    %0 = vector.load %arg1[%c0, %c0_0] : memref<8x16xf32, #tpu.memory_space<vmem>>, vector<8x16xf32>
    %c0_1 = arith.constant 0 : index
    %c0_2 = arith.constant 0 : index
    %1 = vector.load %arg2[%c0_1, %c0_2] : memref<16x128xf32, #tpu.memory_space<vmem>>, vector<16x128xf32>
    %cst = arith.constant dense<0.000000e+00> : vector<8x128xf32>
    %2 = tpu.matmul %0, %1, %cst {dimension_numbers = #tpu.dot_dimension_numbers<[1], [0], [0], [1], [0, 0, 1, 1], [], []>} : vector<8x16xf32>, vector<16x128xf32>, vector<8x128xf32> -> vector<8x128xf32>
    %cst_3 = arith.constant 0.000000e+00 : f32
    %3 = vector.broadcast %cst_3 : f32 to vector<8x128xf32>
    %4 = arith.maximumf %2, %3 : vector<8x128xf32>
    %c0_4 = arith.constant 0 : index
    %c0_5 = arith.constant 0 : index
    %5 = vector.load %arg3[%c0_4, %c0_5] : memref<1x128xf32, #tpu.memory_space<vmem>>, vector<1x128xf32>
    %6 = vector.broadcast %5 : vector<1x128xf32> to vector<8x128xf32>
    %7 = arith.mulf %4, %6 : vector<8x128xf32>
    %c0_6 = arith.constant 0 : index
    %c0_7 = arith.constant 0 : index
    %8 = vector.load %arg4[%c0_6, %c0_7] : memref<1x128xf32, #tpu.memory_space<vmem>>, vector<1x128xf32>
    %9 = vector.broadcast %8 : vector<1x128xf32> to vector<8x128xf32>
    %10 = arith.addf %7, %9 : vector<8x128xf32>
    %11 = vector.extract_strided_slice %10 {offsets = [0, 0], sizes = [8, 32], strides = [1, 1]} : vector<8x128xf32> to vector<8x32xf32>
    %12 = vector.extract_strided_slice %10 {offsets = [0, 32], sizes = [8, 32], strides = [1, 1]} : vector<8x128xf32> to vector<8x32xf32>
    %13 = arith.maximumf %11, %12 : vector<8x32xf32>
    %14 = vector.extract_strided_slice %10 {offsets = [0, 64], sizes = [8, 32], strides = [1, 1]} : vector<8x128xf32> to vector<8x32xf32>
    %15 = vector.extract_strided_slice %10 {offsets = [0, 96], sizes = [8, 32], strides = [1, 1]} : vector<8x128xf32> to vector<8x32xf32>
    %16 = arith.maximumf %14, %15 : vector<8x32xf32>
    %17 = arith.maximumf %13, %16 : vector<8x32xf32>
    %c0_8 = arith.constant 0 : index
    %c0_9 = arith.constant 0 : index
    %18 = vector.load %arg5[%c0_8, %c0_9] : memref<32x128xf32, #tpu.memory_space<vmem>>, vector<32x128xf32>
    %cst_10 = arith.constant dense<0.000000e+00> : vector<8x128xf32>
    %19 = tpu.matmul %17, %18, %cst_10 {dimension_numbers = #tpu.dot_dimension_numbers<[1], [0], [0], [1], [0, 0, 1, 1], [], []>} : vector<8x32xf32>, vector<32x128xf32>, vector<8x128xf32> -> vector<8x128xf32>
    %cst_11 = arith.constant 0.000000e+00 : f32
    %20 = vector.broadcast %cst_11 : f32 to vector<8x128xf32>
    %21 = arith.maximumf %19, %20 : vector<8x128xf32>
    %c0_12 = arith.constant 0 : index
    %c0_13 = arith.constant 0 : index
    %22 = vector.load %arg6[%c0_12, %c0_13] : memref<1x128xf32, #tpu.memory_space<vmem>>, vector<1x128xf32>
    %23 = vector.broadcast %22 : vector<1x128xf32> to vector<8x128xf32>
    %24 = arith.mulf %21, %23 : vector<8x128xf32>
    %c0_14 = arith.constant 0 : index
    %c0_15 = arith.constant 0 : index
    %25 = vector.load %arg7[%c0_14, %c0_15] : memref<1x128xf32, #tpu.memory_space<vmem>>, vector<1x128xf32>
    %26 = vector.broadcast %25 : vector<1x128xf32> to vector<8x128xf32>
    %27 = arith.addf %24, %26 : vector<8x128xf32>
    %28 = vector.extract_strided_slice %27 {offsets = [0, 0], sizes = [8, 32], strides = [1, 1]} : vector<8x128xf32> to vector<8x32xf32>
    %29 = vector.extract_strided_slice %27 {offsets = [0, 32], sizes = [8, 32], strides = [1, 1]} : vector<8x128xf32> to vector<8x32xf32>
    %30 = arith.maximumf %28, %29 : vector<8x32xf32>
    %31 = vector.extract_strided_slice %27 {offsets = [0, 64], sizes = [8, 32], strides = [1, 1]} : vector<8x128xf32> to vector<8x32xf32>
    %32 = vector.extract_strided_slice %27 {offsets = [0, 96], sizes = [8, 32], strides = [1, 1]} : vector<8x128xf32> to vector<8x32xf32>
    %33 = arith.maximumf %31, %32 : vector<8x32xf32>
    %34 = arith.maximumf %30, %33 : vector<8x32xf32>
    %c0_16 = arith.constant 0 : index
    %c0_17 = arith.constant 0 : index
    %35 = vector.load %arg8[%c0_16, %c0_17] : memref<32x64xf32, #tpu.memory_space<vmem>>, vector<32x64xf32>
    %cst_18 = arith.constant dense<0.000000e+00> : vector<8x64xf32>
    %36 = tpu.matmul %34, %35, %cst_18 {dimension_numbers = #tpu.dot_dimension_numbers<[1], [0], [0], [1], [0, 0, 1, 1], [], []>} : vector<8x32xf32>, vector<32x64xf32>, vector<8x64xf32> -> vector<8x64xf32>
    %c0_19 = arith.constant 0 : index
    %c0_20 = arith.constant 0 : index
    %37 = vector.load %arg9[%c0_19, %c0_20] : memref<1x64xf32, #tpu.memory_space<vmem>>, vector<1x64xf32>
    %38 = vector.broadcast %37 : vector<1x64xf32> to vector<8x64xf32>
    %39 = arith.addf %36, %38 : vector<8x64xf32>
    %cst_21 = arith.constant 0.000000e+00 : f32
    %40 = vector.broadcast %cst_21 : f32 to vector<8x64xf32>
    %41 = arith.maximumf %39, %40 : vector<8x64xf32>
    %c0_22 = arith.constant 0 : index
    %c0_23 = arith.constant 0 : index
    %42 = vector.load %arg10[%c0_22, %c0_23] : memref<64x128xf32, #tpu.memory_space<vmem>>, vector<64x128xf32>
    %cst_24 = arith.constant dense<0.000000e+00> : vector<8x128xf32>
    %43 = tpu.matmul %41, %42, %cst_24 {dimension_numbers = #tpu.dot_dimension_numbers<[1], [0], [0], [1], [0, 0, 1, 1], [], []>} : vector<8x64xf32>, vector<64x128xf32>, vector<8x128xf32> -> vector<8x128xf32>
    %c0_25 = arith.constant 0 : index
    %c0_26 = arith.constant 0 : index
    %44 = vector.load %arg11[%c0_25, %c0_26] : memref<1x128xf32, #tpu.memory_space<vmem>>, vector<1x128xf32>
    %45 = vector.broadcast %44 : vector<1x128xf32> to vector<8x128xf32>
    %46 = arith.addf %43, %45 : vector<8x128xf32>
    %cst_27 = arith.constant 0.000000e+00 : f32
    %47 = vector.broadcast %cst_27 : f32 to vector<8x128xf32>
    %48 = arith.maximumf %46, %47 : vector<8x128xf32>
    %c0_28 = arith.constant 0 : index
    %c0_29 = arith.constant 0 : index
    %49 = vector.load %arg12[%c0_28, %c0_29] : memref<128x64xf32, #tpu.memory_space<vmem>>, vector<128x64xf32>
    %cst_30 = arith.constant dense<0.000000e+00> : vector<8x64xf32>
    %50 = tpu.matmul %48, %49, %cst_30 {dimension_numbers = #tpu.dot_dimension_numbers<[1], [0], [0], [1], [0, 0, 1, 1], [], []>} : vector<8x128xf32>, vector<128x64xf32>, vector<8x64xf32> -> vector<8x64xf32>
    %c0_31 = arith.constant 0 : index
    %c0_32 = arith.constant 0 : index
    %51 = vector.load %arg13[%c0_31, %c0_32] : memref<1x64xf32, #tpu.memory_space<vmem>>, vector<1x64xf32>
    %52 = vector.broadcast %51 : vector<1x64xf32> to vector<8x64xf32>
    %53 = arith.addf %50, %52 : vector<8x64xf32>
    %cst_33 = arith.constant 0.000000e+00 : f32
    %54 = vector.broadcast %cst_33 : f32 to vector<8x64xf32>
    %55 = arith.maximumf %53, %54 : vector<8x64xf32>
    %c0_34 = arith.constant 0 : index
    %c0_35 = arith.constant 0 : index
    %56 = vector.load %arg14[%c0_34, %c0_35] : memref<64x128xf32, #tpu.memory_space<vmem>>, vector<64x128xf32>
    %cst_36 = arith.constant dense<0.000000e+00> : vector<8x128xf32>
    %57 = tpu.matmul %55, %56, %cst_36 {dimension_numbers = #tpu.dot_dimension_numbers<[1], [0], [0], [1], [0, 0, 1, 1], [], []>} : vector<8x64xf32>, vector<64x128xf32>, vector<8x128xf32> -> vector<8x128xf32>
    %c0_37 = arith.constant 0 : index
    %c0_38 = arith.constant 0 : index
    %58 = vector.load %arg15[%c0_37, %c0_38] : memref<1x128xf32, #tpu.memory_space<vmem>>, vector<1x128xf32>
    %59 = vector.broadcast %58 : vector<1x128xf32> to vector<8x128xf32>
    %60 = arith.addf %57, %59 : vector<8x128xf32>
    %c0_39 = arith.constant 0 : index
    %c0_40 = arith.constant 0 : index
    %61 = vector.load %arg16[%c0_39, %c0_40] : memref<8x128xf32, #tpu.memory_space<vmem>>, vector<8x128xf32>
    tpu.vector_store %arg16[%c0_39, %c0_40], %60 {strides = array<i32>} : memref<8x128xf32, #tpu.memory_space<vmem>>, vector<8x128xf32>,
    return
  }
  func.func @transform_0(%arg0: i32) -> (i32, i32) {
    %c0_i32 = arith.constant 0 : i32
    %c0_i32_0 = arith.constant 0 : i32
    return %arg0, %c0_i32 : i32, i32
  }
  func.func @transform_1(%arg0: i32) -> (i32, i32) {
    %c0_i32 = arith.constant 0 : i32
    %c0_i32_0 = arith.constant 0 : i32
    %c0_i32_1 = arith.constant 0 : i32
    return %c0_i32, %c0_i32_0 : i32, i32
  }
  func.func @transform_2(%arg0: i32) -> (i32, i32) {
    %c0_i32 = arith.constant 0 : i32
    %c0_i32_0 = arith.constant 0 : i32
    %c0_i32_1 = arith.constant 0 : i32
    return %c0_i32, %c0_i32_0 : i32, i32
  }
  func.func @transform_3(%arg0: i32) -> (i32, i32) {
    %c0_i32 = arith.constant 0 : i32
    %c0_i32_0 = arith.constant 0 : i32
    %c0_i32_1 = arith.constant 0 : i32
    return %c0_i32, %c0_i32_0 : i32, i32
  }
  func.func @transform_4(%arg0: i32) -> (i32, i32) {
    %c0_i32 = arith.constant 0 : i32
    %c0_i32_0 = arith.constant 0 : i32
    %c0_i32_1 = arith.constant 0 : i32
    return %c0_i32, %c0_i32_0 : i32, i32
  }
  func.func @transform_5(%arg0: i32) -> (i32, i32) {
    %c0_i32 = arith.constant 0 : i32
    %c0_i32_0 = arith.constant 0 : i32
    %c0_i32_1 = arith.constant 0 : i32
    return %c0_i32, %c0_i32_0 : i32, i32
  }
  func.func @transform_6(%arg0: i32) -> (i32, i32) {
    %c0_i32 = arith.constant 0 : i32
    %c0_i32_0 = arith.constant 0 : i32
    %c0_i32_1 = arith.constant 0 : i32
    return %c0_i32, %c0_i32_0 : i32, i32
  }
  func.func @transform_7(%arg0: i32) -> (i32, i32) {
    %c0_i32 = arith.constant 0 : i32
    %c0_i32_0 = arith.constant 0 : i32
    %c0_i32_1 = arith.constant 0 : i32
    return %c0_i32, %c0_i32_0 : i32, i32
  }
  func.func @transform_8(%arg0: i32) -> (i32, i32) {
    %c0_i32 = arith.constant 0 : i32
    %c0_i32_0 = arith.constant 0 : i32
    %c0_i32_1 = arith.constant 0 : i32
    return %c0_i32, %c0_i32_0 : i32, i32
  }
  func.func @transform_9(%arg0: i32) -> (i32, i32) {
    %c0_i32 = arith.constant 0 : i32
    %c0_i32_0 = arith.constant 0 : i32
    %c0_i32_1 = arith.constant 0 : i32
    return %c0_i32, %c0_i32_0 : i32, i32
  }
  func.func @transform_10(%arg0: i32) -> (i32, i32) {
    %c0_i32 = arith.constant 0 : i32
    %c0_i32_0 = arith.constant 0 : i32
    %c0_i32_1 = arith.constant 0 : i32
    return %c0_i32, %c0_i32_0 : i32, i32
  }
  func.func @transform_11(%arg0: i32) -> (i32, i32) {
    %c0_i32 = arith.constant 0 : i32
    %c0_i32_0 = arith.constant 0 : i32
    %c0_i32_1 = arith.constant 0 : i32
    return %c0_i32, %c0_i32_0 : i32, i32
  }
  func.func @transform_12(%arg0: i32) -> (i32, i32) {
    %c0_i32 = arith.constant 0 : i32
    %c0_i32_0 = arith.constant 0 : i32
    %c0_i32_1 = arith.constant 0 : i32
    return %c0_i32, %c0_i32_0 : i32, i32
  }
  func.func @transform_13(%arg0: i32) -> (i32, i32) {
    %c0_i32 = arith.constant 0 : i32
    %c0_i32_0 = arith.constant 0 : i32
    %c0_i32_1 = arith.constant 0 : i32
    return %c0_i32, %c0_i32_0 : i32, i32
  }
  func.func @transform_14(%arg0: i32) -> (i32, i32) {
    %c0_i32 = arith.constant 0 : i32
    %c0_i32_0 = arith.constant 0 : i32
    %c0_i32_1 = arith.constant 0 : i32
    return %c0_i32, %c0_i32_0 : i32, i32
  }
  func.func @transform_15(%arg0: i32) -> (i32, i32) {
    %c0_i32 = arith.constant 0 : i32
    %c0_i32_0 = arith.constant 0 : i32
    return %arg0, %c0_i32 : i32, i32
  }
}

</mosaic_0001>

<bundles_post_ra>
// kernel: tile.24
= control target key start
LH: loop header
LB: loop body
LE: loop exit
PB: predicated region body
PF: predicated region fallthrough
CT: control target
= control target key end

     0   :  { %s131_s10 = smov 120   ;;  %s132_s11 = smov 104   ;;  %vm3_vm0 = vcmask 64512   ;;  %vm9_vm1 = vcmask 1048512   ;;  %vm15_vm2 = vcmask 982912   ;;  %vm21_vm3 = vcmask 917312   ;;  %s207_s0 = inlined_call_operand.vmem [shape: f32[16,8], index: 0, kind: input, shape index: {}]   ;;  %s208_s1 = inlined_call_operand.vmem [shape: f32[1,128], index: 1, kind: output, shape index: {}]  }
   0x1   :  { %v101_v0 = vld [vmem:[%s207_s0 + $0xf] sm:$0x1]   ;;  %v103_v1 = vld [vmem:[%s207_s0 + $0xd] sm:$0x1]   ;;  %v102_v2 = vld [vmem:[%s207_s0 + $0xe] sm:$0x1]  }
   0x2   :  { %7 = vrot.lane.b32.xlu0 %v101_v0, %s131_s10  ;;  %19 = vrot.lane.b32.xlu1 %v103_v1, %s132_s11  ;;  %v104_v3 = vld [vmem:[%s207_s0 + $0xc] sm:$0x1]   ;;  %s133_s16 = smov 112   ;;  %s134_s17 = smov 96   ;;  %v105_v4 = vld [vmem:[%s207_s0 + $0xb] sm:$0x1]  }
   0x3   :  { %v106_v5 = vld [vmem:[%s207_s0 + $0xa] sm:$0x1]   ;;  %v2_v6 = vld [vmem:[%s207_s0] sm:$0x1]   ;;  %s135_s24 = smov 88   ;;  %s136_s25 = smov 80  }
   0x4   :  { %4 = vst.msk [vmem:[#allocation0] sm:$0x1] %vm3_vm0, %v2_v6   ;;  %v107_v7 = vld [vmem:[%s207_s0 + $0x9] sm:$0x1]   ;;  %v108_v8 = vld [vmem:[%s207_s0 + $0x8] sm:$0x1]  }
   0x5   :  { %s137_s30 = smov 72   ;;  %s138_s2 = smov 64   ;;  %v109_v9 = vld [vmem:[%s207_s0 + $0x7] sm:$0x1]   ;;  %v110_v10 = vld [vmem:[%s207_s0 + $0x6] sm:$0x1]  }
   0x6   :  { %13 = vrot.lane.b32.xlu0 %v102_v2, %s133_s16  ;;  %25 = vrot.lane.b32.xlu1 %v104_v3, %s134_s17  ;;  %s139_s7 = smov 56   ;;  %s140_s8 = smov 48   ;;  %v111_v11 = vld [vmem:[%s207_s0 + $0x5] sm:$0x1]   ;;  %v112_v12 = vld [vmem:[%s207_s0 + $0x4] sm:$0x1]  }
   0x7   :  { %s141_s13 = smov 40   ;;  %s142_s14 = smov 32   ;;  %v113_v13 = vld [vmem:[%s207_s0 + $0x3] sm:$0x1]   ;;  %v114_v14 = vld [vmem:[%s207_s0 + $0x2] sm:$0x1]  }
   0x8   :  { %s143_s19 = smov 24   ;;  %s144_s20 = smov 16   ;;  %v115_v15 = vld [vmem:[%s207_s0 + $0x1] sm:$0x1]   ;;  %vm27_vm4 = vcmask 851712   ;;  %vm33_vm5 = vcmask 786112  }
   0x9   :  { %s145_s0 = smov 8   ;;  %vm39_vm6 = vcmask 720512   ;;  %vm45_vm7 = vcmask 654912   ;;  %vm51_vm8 = vcmask 589312   ;;  %vm57_vm9 = vcmask 523712  }
   0xa   :  { %31 = vrot.lane.b32.xlu0 %v105_v4, %s135_s24  ;;  %37 = vrot.lane.b32.xlu1 %v106_v5, %s136_s25  ;;  %vm63_vm10 = vcmask 458112   ;;  %vm69_vm11 = vcmask 392512   ;;  %vm75_vm12 = vcmask 326912   ;;  %vm81_vm13 = vcmask 261312  }
   0xb   :  { %vm87_vm14 = vcmask 195712   ;;  %vm93_vm15 = vcmask 130112  }
   0xe   :  { %43 = vrot.lane.b32.xlu0 %v107_v7, %s137_s30  ;;  %49 = vrot.lane.b32.xlu1 %v108_v8, %s138_s2 }
  0x12   :  { %55 = vrot.lane.b32.xlu0 %v109_v9, %s139_s7  ;;  %61 = vrot.lane.b32.xlu1 %v110_v10, %s140_s8 }
  0x16   :  { %67 = vrot.lane.b32.xlu0 %v111_v11, %s141_s13  ;;  %73 = vrot.lane.b32.xlu1 %v112_v12, %s142_s14 }
  0x1a   :  { %79 = vrot.lane.b32.xlu0 %v113_v13, %s143_s19  ;;  %85 = vrot.lane.b32.xlu1 %v114_v14, %s144_s20 }
  0x1e   :  { %91 = vrot.lane.b32.xlu0 %v115_v15, %s145_s0 }
  0x74   :  { %v8_v16 = vpop.permute.xlu0 %7   ;;  %v20_v17 = vpop.permute.xlu1 %19  }
  0x75   :  { %10 = vst.msk [vmem:[#allocation0] sm:$0x1] %vm9_vm1, %v8_v16  }
  0x78   :  { %v14_v18 = vpop.permute.xlu0 %13   ;;  %v26_v19 = vpop.permute.xlu1 %25  }
  0x79   :  { %16 = vst.msk [vmem:[#allocation0] sm:$0x1] %vm15_vm2, %v14_v18  }
  0x7a   :  { %22 = vst.msk [vmem:[#allocation0] sm:$0x1] %vm21_vm3, %v20_v17  }
  0x7b   :  { %28 = vst.msk [vmem:[#allocation0] sm:$0x1] %vm27_vm4, %v26_v19  }
  0x7c   :  { %v32_v20 = vpop.permute.xlu0 %31   ;;  %v38_v21 = vpop.permute.xlu1 %37  }
  0x7d   :  { %34 = vst.msk [vmem:[#allocation0] sm:$0x1] %vm33_vm5, %v32_v20  }
  0x7e   :  { %40 = vst.msk [vmem:[#allocation0] sm:$0x1] %vm39_vm6, %v38_v21  }
  0x80   :  { %v44_v22 = vpop.permute.xlu0 %43   ;;  %v50_v23 = vpop.permute.xlu1 %49  }
  0x81   :  { %46 = vst.msk [vmem:[#allocation0] sm:$0x1] %vm45_vm7, %v44_v22  }
  0x82   :  { %52 = vst.msk [vmem:[#allocation0] sm:$0x1] %vm51_vm8, %v50_v23  }
  0x84   :  { %v56_v24 = vpop.permute.xlu0 %55   ;;  %v62_v25 = vpop.permute.xlu1 %61  }
  0x85   :  { %58 = vst.msk [vmem:[#allocation0] sm:$0x1] %vm57_vm9, %v56_v24  }
  0x86   :  { %64 = vst.msk [vmem:[#allocation0] sm:$0x1] %vm63_vm10, %v62_v25  }
  0x88   :  { %v68_v26 = vpop.permute.xlu0 %67   ;;  %v74_v27 = vpop.permute.xlu1 %73  }
  0x89   :  { %70 = vst.msk [vmem:[#allocation0] sm:$0x1] %vm69_vm11, %v68_v26  }
  0x8a   :  { %76 = vst.msk [vmem:[#allocation0] sm:$0x1] %vm75_vm12, %v74_v27  }
  0x8c   :  { %v80_v28 = vpop.permute.xlu0 %79   ;;  %v86_v29 = vpop.permute.xlu1 %85  }
  0x8d   :  { %82 = vst.msk [vmem:[#allocation0] sm:$0x1] %vm81_vm13, %v80_v28  }
  0x8e   :  { %88 = vst.msk [vmem:[#allocation0] sm:$0x1] %vm87_vm14, %v86_v29  }
  0x90   :  { %v92_v30 = vpop.permute.xlu0 %91  }
  0x91   :  { %94 = vst.msk [vmem:[#allocation0] sm:$0x1] %vm93_vm15, %v92_v30  }
  0x98   :  { %v98_v31 = vld [vmem:[#allocation0] sm:$0x1] }
  0x99   :  { %100 = vst [vmem:[%s208_s1] sm:$0x1] %v98_v31 }

// kernel: tile.23
= control target key start
LH: loop header
LB: loop body
LE: loop exit
PB: predicated region body
PF: predicated region fallthrough
CT: control target
= control target key end

     0   :  { %s28_s0 = inlined_call_operand.vmem [shape: f32[8], index: 0, kind: input, shape index: {}]   ;;  %s29_s1 = inlined_call_operand.vmem [shape: f32[16,8], index: 1, kind: output, shape index: {}]  }
   0x1   :  { %v4_v0 = vld [vmem:[%s28_s0] ss:$0 sm:$0xff] }
   0x2   :  { %5 = vst [vmem:[%s29_s1] sm:$0xff] %v4_v0  ;;  %8 = vst [vmem:[%s29_s1 + $0x8] sm:$0xff] %v4_v0 }

// kernel: tile.34
= control target key start
LH: loop header
LB: loop body
LE: loop exit
PB: predicated region body
PF: predicated region fallthrough
CT: control target
= control target key end

     0   :  { %vm7_vm0 = vcmask 261120   ;;  %s37_s8 = smov 32   ;;  %s38_s9 = smov 64   ;;  %vm13_vm1 = vcmask 1048320   ;;  %vm19_vm2 = vcmask 785920   ;;  %vm25_vm3 = vcmask 523520   ;;  %s55_s0 = inlined_call_operand.vmem [shape: f32[4,32], index: 0, kind: input, shape index: {}]   ;;  %s56_s1 = inlined_call_operand.vmem [shape: f32[1,128], index: 1, kind: output, shape index: {}]  }
   0x1   :  { %v4_v0 = vld [vmem:[%s55_s0] sm:$0xf]  ;;  %s36_s0 = smov 96  }
   0x2   :  { %5 = vst [vmem:[#allocation1] sm:$0xf] %v4_v0 }
   0x9   :  { %v10_v1 = vld [vmem:[#allocation1 + $0x3] sm:$0x1]   ;;  %v22_v2 = vld [vmem:[#allocation1 + $0x1] sm:$0x1]   ;;  %v6_v3 = vld [vmem:[#allocation1] sm:$0x1]  }
   0xa   :  { %11 = vrot.lane.b32.xlu0 %v10_v1, %s36_s0  ;;  %23 = vrot.lane.b32.xlu1 %v22_v2, %s37_s8  ;;  %v16_v4 = vld [vmem:[#allocation1 + $0x2] sm:$0x1]   ;;  %8 = vst.msk [vmem:[#allocation0] sm:$0x1] %vm7_vm0, %v6_v3  }
   0xe   :  { %17 = vrot.lane.b32.xlu0 %v16_v4, %s38_s9 }
  0x7c   :  { %v12_v5 = vpop.permute.xlu0 %11   ;;  %v24_v6 = vpop.permute.xlu1 %23  }
  0x7d   :  { %14 = vst.msk [vmem:[#allocation0] sm:$0x1] %vm13_vm1, %v12_v5  }
  0x80   :  { %v18_v7 = vpop.permute.xlu0 %17  }
  0x81   :  { %20 = vst.msk [vmem:[#allocation0] sm:$0x1] %vm19_vm2, %v18_v7  }
  0x82   :  { %26 = vst.msk [vmem:[#allocation0] sm:$0x1] %vm25_vm3, %v24_v6  }
  0x89   :  { %v30_v8 = vld [vmem:[#allocation0] sm:$0x1] }
  0x8a   :  { %32 = vst [vmem:[%s56_s1] sm:$0x1] %v30_v8 }

// kernel: tile.33
= control target key start
LH: loop header
LB: loop body
LE: loop exit
PB: predicated region body
PF: predicated region fallthrough
CT: control target
= control target key end

     0   :  { %s22_s0 = inlined_call_operand.vmem [shape: f32[32], index: 0, kind: input, shape index: {}]   ;;  %s23_s1 = inlined_call_operand.vmem [shape: f32[4,32], index: 1, kind: output, shape index: {}]  }
   0x1   :  { %v4_v0 = vld [vmem:[%s22_s0] ss:$0 sm:$0xff] }
   0x2   :  { %5 = vst [vmem:[%s23_s1] sm:$0xf] %v4_v0 }

// kernel: forward.1
= control target key start
LH: loop header
LB: loop body
LE: loop exit
PB: predicated region body
PF: predicated region fallthrough
CT: control target
= control target key end

     0   :  { %v852_v0 = vmov 0.0|0.0   ;;  %vm853_vm0 = vmmov 0   ;;  %v854_v3 = vmov 0.0   ;;  %vm53_vm1 = vcmask 130048   ;;  %s1134_s1 = inlined_call_operand.vmem [shape: f32[16,128], index: 1, kind: input, shape index: {}]   ;;  %s1135_s0 = inlined_call_operand.vmem [shape: f32[8,16], index: 0, kind: input, shape index: {}]   ;;  %s1136_s4 = inlined_call_operand.vmem [shape: f32[32,128], index: 4, kind: input, shape index: {}]   ;;  %s1137_s2 = inlined_call_operand.vmem [shape: f32[1,128], index: 2, kind: input, shape index: {}]   ;;  %s1138_s3 = inlined_call_operand.vmem [shape: f32[1,128], index: 3, kind: input, shape index: {}]   ;;  %s1139_s7 = inlined_call_operand.vmem [shape: f32[32,64], index: 7, kind: input, shape index: {}]   ;;  %s1140_s5 = inlined_call_operand.vmem [shape: f32[1,128], index: 5, kind: input, shape index: {}]   ;;  %s1141_s6 = inlined_call_operand.vmem [shape: f32[1,128], index: 6, kind: input, shape index: {}]   ;;  %s1142_s9 = inlined_call_operand.vmem [shape: f32[64,128], index: 9, kind: input, shape index: {}]   ;;  %s1143_s11 = inlined_call_operand.vmem [shape: f32[128,64], index: 11, kind: input, shape index: {}]   ;;  %s1144_s8 = inlined_call_operand.vmem [shape: f32[1,64], index: 8, kind: input, shape index: {}]   ;;  %s1145_s13 = inlined_call_operand.vmem [shape: f32[64,128], index: 13, kind: input, shape index: {}]   ;;  %s1146_s10 = inlined_call_operand.vmem [shape: f32[1,128], index: 10, kind: input, shape index: {}]   ;;  %s1147_s12 = inlined_call_operand.vmem [shape: f32[1,64], index: 12, kind: input, shape index: {}]   ;;  %s1148_s14 = inlined_call_operand.vmem [shape: f32[1,128], index: 14, kind: input, shape index: {}]   ;;  %s1149_s15 = inlined_call_operand.vmem [shape: f32[8,128], index: 15, kind: output, shape index: {}]  }
   0x1   :  { %784 = vmatprep.subr.bf16.mxu0 %v852_v0  ;;  %v51_v1 = vld [vmem:[%s1134_s1] sm:$0xff]  ;;  %v52_v2 = vld [vmem:[%s1134_s1 + $0x8] sm:$0xff]  ;;  %686 = vmatprep.mubr.msk.f32.mxu0 %vm853_vm0, %v854_v3  ;;  %v156_v8 = vld [vmem:[%s1136_s4 + $0x10] sm:$0xff]  ;;  %vm158_vm2 = vcmask 261120   ;;  %vm359_vm3 = vcmask 523264  }
   0x2   :  { %v785_v4 = vpack.c.bf16 %v52_v2, %v51_v1  ;;  %787 = vmatprep.subr.bf16.mxu1 %v852_v0  ;;  %697 = vmatprep.mubr.msk.f32.mxu1 %vm853_vm0, %v854_v3  ;;  %v50_v5 = vld [vmem:[%s1135_s0] sm:$0xff]  ;;  %v155_v7 = vld [vmem:[%s1136_s4 + $0x8] sm:$0xff]  ;;  %v157_v10 = vld [vmem:[%s1136_s4 + $0x18] sm:$0xff] }
   0x3   :  { %v154_v6 = vld [vmem:[%s1136_s4] sm:$0xff]  ;;  %v791_v13 = vpack.c.bf16 %v157_v10, %v156_v8  ;;  %s855_s4 = smov 96   ;;  %v260_v24 = vld [vmem:[%s1139_s7 + $0x8] sm:$0xff]  ;;  %v261_v25 = vld [vmem:[%s1139_s7 + $0x10] sm:$0xff] }
   0x4   :  { %786 = vmatpush3.bf16.msra.mxu0 %v785_v4  ;;  %v788_v9 = vpack.c.bf16 %v155_v7, %v154_v6  ;;  %v622_v12 = vld [vmem:[%s1137_s2] ss:$0 sm:$0xff]  ;;  %s856_s2 = smov 64   ;;  %v262_v27 = vld [vmem:[%s1139_s7 + $0x18] sm:$0xff]  ;;  %v345_v37 = vld [vmem:[%s1142_s9 + $0x8] sm:$0xff] }
   0x5   :  { %793 = vmatprep.subr.bf16.mxu0 %v852_v0  ;;  %v623_v16 = vld [vmem:[%s1138_s3] ss:$0 sm:$0xff]  ;;  %v797_v30 = vpack.c.bf16 %v262_v27, %v261_v25  ;;  %v346_v38 = vld [vmem:[%s1142_s9 + $0x10] sm:$0xff]  ;;  %v347_v40 = vld [vmem:[%s1142_s9 + $0x18] sm:$0xff] }
   0x6   :  { %789 = vmatpush3.bf16.msra.mxu1 %v788_v9  ;;  %v259_v23 = vld [vmem:[%s1139_s7] sm:$0xff]  ;;  %v803_v41 = vpack.c.bf16 %v347_v40, %v346_v38  ;;  %v349_v43 = vld [vmem:[%s1142_s9 + $0x28] sm:$0xff]  ;;  %v350_v49 = vld [vmem:[%s1142_s9 + $0x30] sm:$0xff] }
   0x7   :  { %687 = vmatmul.mubr.msk.f32.vlgmr.msra.gmra.mrb[0].mxu0 %vm53_vm1, %v50_v5  ;;  %790 = vmatprep.subr.bf16.mxu1 %v852_v0  ;;  %v794_v26 = vpack.c.bf16 %v260_v24, %v259_v23  ;;  %v625_v29 = vld [vmem:[%s1140_s5] ss:$0 sm:$0xff]  ;;  %v351_v50 = vld [vmem:[%s1142_s9 + $0x38] sm:$0xff]  ;;  %v435_v53 = vld [vmem:[%s1143_s11 + $0x8] sm:$0xff] }
   0x8   :  { %708 = vmatprep.mubr.msk.f32.mxu0 %vm853_vm0, %v854_v3  ;;  %v626_v33 = vld [vmem:[%s1141_s6] ss:$0 sm:$0xff]  ;;  %v809_v51 = vpack.c.bf16 %v351_v50, %v350_v49  ;;  %v436_v54 = vld [vmem:[%s1143_s11 + $0x10] sm:$0xff]  ;;  %v437_v56 = vld [vmem:[%s1143_s11 + $0x18] sm:$0xff] }
   0x9   :  { %795 = vmatpush3.bf16.msra.mxu0 %v794_v26  ;;  %v344_v36 = vld [vmem:[%s1142_s9] sm:$0xff]  ;;  %v815_v57 = vpack.c.bf16 %v437_v56, %v436_v54  ;;  %v439_v59 = vld [vmem:[%s1143_s11 + $0x28] sm:$0xff]  ;;  %v440_v61 = vld [vmem:[%s1143_s11 + $0x30] sm:$0xff] }
   0xa   :  { %792 = vmatpush3.bf16.msra.mxu1 %v791_v13  ;;  %796 = vmatprep.subr.bf16.mxu0 %v852_v0  ;;  %v800_v39 = vpack.c.bf16 %v345_v37, %v344_v36  ;;  %v348_v42 = vld [vmem:[%s1142_s9 + $0x20] sm:$0xff]  ;;  %v441_v62 = vld [vmem:[%s1143_s11 + $0x38] sm:$0xff]  ;;  %v443_v2 = vld [vmem:[%s1143_s11 + $0x48] sm:$0xff] }
   0xb   :  { %799 = vmatprep.subr.bf16.mxu1 %v852_v0  ;;  %v806_v45 = vpack.c.bf16 %v349_v43, %v348_v42  ;;  %v434_v52 = vld [vmem:[%s1143_s11] sm:$0xff]  ;;  %v821_v63 = vpack.c.bf16 %v441_v62, %v440_v61  ;;  %v444_v5 = vld [vmem:[%s1143_s11 + $0x50] sm:$0xff]  ;;  %v445_v6 = vld [vmem:[%s1143_s11 + $0x58] sm:$0xff] }
   0xc   :  { %v812_v55 = vpack.c.bf16 %v435_v53, %v434_v52  ;;  %v438_v58 = vld [vmem:[%s1143_s11 + $0x20] sm:$0xff]  ;;  %v827_v7 = vpack.c.bf16 %v445_v6, %v444_v5  ;;  %v447_v9 = vld [vmem:[%s1143_s11 + $0x68] sm:$0xff] }
   0xd   :  { %798 = vmatpush3.bf16.msra.mxu0 %v797_v30  ;;  %v818_v60 = vpack.c.bf16 %v439_v59, %v438_v58  ;;  %v442_v1 = vld [vmem:[%s1143_s11 + $0x40] sm:$0xff]  ;;  %v533_v25 = vld [vmem:[%s1145_s13 + $0x28] sm:$0xff] }
   0xe   :  { %811 = vmatprep.subr.bf16.mxu0 %v852_v0  ;;  %v824_v4 = vpack.c.bf16 %v443_v2, %v442_v1  ;;  %v446_v8 = vld [vmem:[%s1143_s11 + $0x60] sm:$0xff] }
   0xf   :  { %v830_v10 = vpack.c.bf16 %v447_v9, %v446_v8  ;;  %v532_v24 = vld [vmem:[%s1145_s13 + $0x20] sm:$0xff] }
  0x10   :  { %v842_v26 = vpack.c.bf16 %v533_v25, %v532_v24  ;;  %v629_v27 = vld [vmem:[%s1146_s10] ss:$0 sm:$0xff] }
  0xda   :  { %v123_v11 = vpop.f32.mrb[0].mxu0 }
  0xdb   :  { %v127_v14 = vmax.f32 %v123_v11, 0.0  ;;  %v688_v15 = vpop.f32.mrb[1].mxu0  ;;  %v627_v11 = vld [vmem:[%s1144_s8] ss:$0 sm:$0xff] }
  0xdd   :  { %v135_v17 = vmul.f32 %v622_v12, %v127_v14 }
  0xdf   :  { %v143_v18 = vadd.f32 %v623_v16, %v135_v17  ;;  %v448_v16 = vld [vmem:[%s1143_s11 + $0x70] sm:$0xff]  ;;  %v449_v17 = vld [vmem:[%s1143_s11 + $0x78] sm:$0xff] }
  0xe1   :  { %145 = vrot.lane.b32.xlu0 %v143_v18, %s855_s4 }
 0x153   :  { %v146_v19 = vpop.permute.xlu0 %145 }
 0x154   :  { %v148_v20 = vmax.f32 %v143_v18, %v146_v19  ;;  %v833_v18 = vpack.c.bf16 %v449_v17, %v448_v16  ;;  %v528_v19 = vld [vmem:[%s1145_s13] sm:$0xff] }
 0x156   :  { %150 = vrot.lane.b32.xlu0 %v148_v20, %s856_s2 }
 0x1c8   :  { %v151_v21 = vpop.permute.xlu0 %150 }
 0x1c9   :  { %v153_v22 = vmax.f32 %v148_v20, %v151_v21  ;;  %v529_v20 = vld [vmem:[%s1145_s13 + $0x8] sm:$0xff] }
 0x1ca   :  { %v836_v21 = vpack.c.bf16 %v529_v20, %v528_v19 }
 0x1cb   :  { %698 = vmatmul.mubr.msk.f32.vlgmr.msra.gmra.mrb[0].mxu1 %vm158_vm2, %v153_v22  ;;  %v531_v22 = vld [vmem:[%s1145_s13 + $0x18] sm:$0xff] }
 0x1cc   :  { %727 = vmatprep.mubr.msk.f32.mxu1 %vm853_vm0, %v854_v3  ;;  %801 = vmatpush3.bf16.msra.mxu1 %v800_v39  ;;  %v632_v39 = vld [vmem:[%s1148_s14] ss:$0 sm:$0xff] }
 0x1cd   :  { %802 = vmatprep.subr.bf16.mxu1 %v852_v0 }
 0x1d0   :  { %804 = vmatpush3.bf16.msra.mxu1 %v803_v41 }
 0x1d1   :  { %805 = vmatprep.subr.bf16.mxu1 %v852_v0 }
 0x1d4   :  { %807 = vmatpush3.bf16.msra.mxu1 %v806_v45 }
 0x1d5   :  { %808 = vmatprep.subr.bf16.mxu1 %v852_v0 }
 0x1d8   :  { %810 = vmatpush3.bf16.msra.mxu1 %v809_v51 }
 0x1d9   :  { %835 = vmatprep.subr.bf16.mxu1 %v852_v0 }
 0x29e   :  { %v228_v28 = vpop.f32.mrb[0].mxu1 }
 0x29f   :  { %v232_v31 = vmax.f32 %v228_v28, 0.0  ;;  %v699_v32 = vpop.f32.mrb[1].mxu1 }
 0x2a0   :  { %v534_v32 = vld [vmem:[%s1145_s13 + $0x30] sm:$0xff] }
 0x2a1   :  { %v240_v34 = vmul.f32 %v625_v29, %v232_v31 }
 0x2a3   :  { %v248_v35 = vadd.f32 %v626_v33, %v240_v34  ;;  %v535_v33 = vld [vmem:[%s1145_s13 + $0x38] sm:$0xff] }
 0x2a4   :  { %v845_v34 = vpack.c.bf16 %v535_v33, %v534_v32 }
 0x2a5   :  { %250 = vrot.lane.b32.xlu1 %v248_v35, %s855_s4 }
 0x317   :  { %v251_v44 = vpop.permute.xlu1 %250 }
 0x318   :  { %v253_v46 = vmax.f32 %v248_v35, %v251_v44 }
 0x31a   :  { %255 = vrot.lane.b32.xlu1 %v253_v46, %s856_s2 }
 0x38c   :  { %v256_v47 = vpop.permute.xlu1 %255 }
 0x38d   :  { %v258_v48 = vmax.f32 %v253_v46, %v256_v47 }
 0x38f   :  { %709 = vmatmul.mubr.msk.f32.vlgmr.msra.gmra.mrb[2].mxu0 %vm158_vm2, %v258_v48 }
 0x390   :  { %762 = vmatprep.mubr.msk.f32.mxu0 %vm853_vm0, %v854_v3  ;;  %813 = vmatpush3.bf16.msra.mxu0 %v812_v55 }
 0x391   :  { %814 = vmatprep.subr.bf16.mxu0 %v852_v0 }
 0x394   :  { %816 = vmatpush3.bf16.msra.mxu0 %v815_v57 }
 0x395   :  { %817 = vmatprep.subr.bf16.mxu0 %v852_v0 }
 0x398   :  { %819 = vmatpush3.bf16.msra.mxu0 %v818_v60 }
 0x399   :  { %820 = vmatprep.subr.bf16.mxu0 %v852_v0 }
 0x39c   :  { %822 = vmatpush3.bf16.msra.mxu0 %v821_v63 }
 0x39d   :  { %823 = vmatprep.subr.bf16.mxu0 %v852_v0 }
 0x3a0   :  { %825 = vmatpush3.bf16.msra.mxu0 %v824_v4 }
 0x3a1   :  { %826 = vmatprep.subr.bf16.mxu0 %v852_v0 }
 0x3a4   :  { %828 = vmatpush3.bf16.msra.mxu0 %v827_v7 }
 0x3a5   :  { %829 = vmatprep.subr.bf16.mxu0 %v852_v0 }
 0x3a8   :  { %831 = vmatpush3.bf16.msra.mxu0 %v830_v10 }
 0x3a9   :  { %832 = vmatprep.subr.bf16.mxu0 %v852_v0 }
 0x3ac   :  { %834 = vmatpush3.bf16.msra.mxu0 %v833_v18 }
 0x462   :  { %v339_v12 = vpop.f32.mrb[2].mxu0 }
 0x463   :  { %v340_v13 = vadd.f32 %v627_v11, %v339_v12  ;;  %v710_v14 = vpop.f32.mrb[3].mxu0 }
 0x465   :  { %v343_v15 = vmax.f32 %v340_v13, 0.0 }
 0x467   :  { %728 = vmatmul.mubr.msk.f32.vlgmr.msra.gmra.mrb[2].mxu1 %vm359_vm3, %v343_v15 }
 0x468   :  { %781 = vmatprep.mubr.msk.f32.mxu1 %vm853_vm0, %v854_v3  ;;  %v530_v3 = vld [vmem:[%s1145_s13 + $0x10] sm:$0xff]  ;;  %837 = vmatpush3.bf16.msra.mxu1 %v836_v21 }
 0x469   :  { %v839_v23 = vpack.c.bf16 %v531_v22, %v530_v3  ;;  %838 = vmatprep.subr.bf16.mxu1 %v852_v0 }
 0x46c   :  { %840 = vmatpush3.bf16.msra.mxu1 %v839_v23 }
 0x46d   :  { %841 = vmatprep.subr.bf16.mxu1 %v852_v0 }
 0x470   :  { %843 = vmatpush3.bf16.msra.mxu1 %v842_v26 }
 0x471   :  { %844 = vmatprep.subr.bf16.mxu1 %v852_v0  ;;  %v631_v0 = vld [vmem:[%s1147_s12] ss:$0 sm:$0xff] }
 0x474   :  { %846 = vmatpush3.bf16.msra.mxu1 %v845_v34 }
 0x53a   :  { %v429_v28 = vpop.f32.mrb[2].mxu1 }
 0x53b   :  { %v430_v29 = vadd.f32 %v629_v27, %v429_v28  ;;  %v729_v30 = vpop.f32.mrb[3].mxu1 }
 0x53d   :  { %v433_v31 = vmax.f32 %v430_v29, 0.0 }
 0x53f   :  { %763 = vmatmul.mubr.f32.vlgmr.msra.gmra.mrb[4].mxu0 %v433_v31 }
 0x612   :  { %v523_v35 = vpop.f32.mrb[4].mxu0 }
 0x613   :  { %v524_v36 = vadd.f32 %v631_v0, %v523_v35  ;;  %v764_v37 = vpop.f32.mrb[5].mxu0 }
 0x615   :  { %v527_v38 = vmax.f32 %v524_v36, 0.0 }
 0x617   :  { %782 = vmatmul.mubr.msk.f32.vlgmr.msra.gmra.mrb[4].mxu1 %vm359_vm3, %v527_v38 }
 0x6ea   :  { %v612_v40 = vpop.f32.mrb[4].mxu1 }
 0x6eb   :  { %v613_v41 = vadd.f32 %v632_v39, %v612_v40  ;;  %v783_v42 = vpop.f32.mrb[5].mxu1 }
 0x6ed   :  { %616 = vst [vmem:[%s1149_s15] sm:$0xff] %v613_v41 }

</bundles_post_ra>
